<compile_context>
chip_gen: v7x
topology: tpu7x:2x2x1
jax: 0.10.0
libtpu: 0.0.40
codegen_flags: <defaults>
</compile_context>

<pallas_src>
import functools

import jax
import jax.numpy as jnp
from jax import lax
from jax.experimental import pallas as pl
from jax.experimental.pallas import tpu as pltpu

VMEM = pltpu.MemorySpace.VMEM
MXU_DT = jnp.bfloat16            # MXU operand dtype; accumulation stays float32
LANE = 128                       # lane-dense slab width for node activations
VMEM_LIMIT = 32 * 1024 * 1024    # safe scoped-VMEM limit on v5e/v6e/v7x


def _round_up(v, m):
    return (v + m - 1) // m * m


def _vspec(n):
    return [pl.BlockSpec(memory_space=VMEM) for _ in range(n)]


def _cparams():
    return pltpu.CompilerParams(dimension_semantics=("parallel",),
                                vmem_limit_bytes=VMEM_LIMIT)


def _mm(a, b, dims=None):
    """MXU matmul: bf16 operands, f32 accumulation.

    dims=((lc,), (rc,)) selects a dot_general contraction (e.g. ((1,),(1,)) is
    the A @ B^T form used for the attention-score projections)."""
    a = a.astype(MXU_DT)
    b = b.astype(MXU_DT)
    if dims is None:
        return jnp.dot(a, b, preferred_element_type=jnp.float32)
    return lax.dot_general(a, b, dimension_numbers=(dims, ((), ())),
                           preferred_element_type=jnp.float32)


# --------------------------- fused pre-layer + residual block ----------------
# TODO(synk): Residual_block source not provided; reconstructed as
# x + (4 stacked Linear->ReLU layers of equal width).

def _pre_res_kernel(x_ref, pw_ref, pb_ref,
                    rw0, rb0, rw1, rb1, rw2, rb2, rw3, rb3, o_ref):
    x = jnp.maximum(_mm(x_ref[...], pw_ref[...]) + pb_ref[...], 0.0)
    h = x
    for w_ref, b_ref in ((rw0, rb0), (rw1, rb1), (rw2, rb2), (rw3, rb3)):
        h = jnp.maximum(_mm(h, w_ref[...]) + b_ref[...], 0.0)
    o_ref[...] = (x + h).astype(o_ref.dtype)


def pre_res_block(x, params, tile_m):
    n, nfd = x.shape
    width = params["pre_W"].shape[1]
    wout = _round_up(width, LANE)            # lane-dense output slab width

    def padw(w, rows, cols):
        return jnp.pad(w, ((0, rows - w.shape[0]),
                           (0, cols - w.shape[1]))).astype(MXU_DT)

    def padb(b, cols):
        b2 = jnp.reshape(b, (1, -1))
        return jnp.pad(b2, ((0, 0), (0, cols - b2.shape[1]))).astype(jnp.float32)

    args = [x, padw(params["pre_W"], nfd, wout), padb(params["pre_b"], wout)]
    in_specs = [pl.BlockSpec((tile_m, nfd), lambda i: (i, 0)),
                pl.BlockSpec((nfd, wout), lambda i: (0, 0)),
                pl.BlockSpec((1, wout), lambda i: (0, 0))]
    for i in range(4):
        args += [padw(params["res_W"][i], wout, wout),
                 padb(params["res_b"][i], wout)]
        in_specs += [pl.BlockSpec((wout, wout), lambda i: (0, 0)),
                     pl.BlockSpec((1, wout), lambda i: (0, 0))]

    return pl.pallas_call(
        _pre_res_kernel,
        out_shape=jax.ShapeDtypeStruct((n, wout), MXU_DT),
        grid=(n // tile_m,),
        in_specs=in_specs,
        out_specs=pl.BlockSpec((tile_m, wout), lambda i: (i, 0)),
        compiler_params=_cparams(),
    )(*args)


# --------------------------- GAT layer ---------------------------------------
# Stage 1 (row-parallel, hoisted out of the target grid): WH = x @ W plus the
# per-head attention projections e_src (transposed) and e_dst.

def _gat_transform_kernel(x_ref, w_ref, asrc_ref, adst_ref,
                          wh_ref, est_ref, ed_ref):
    wh = _mm(x_ref[...], w_ref[...])                          # (tm, H*F) f32
    est_ref[...] = _mm(asrc_ref[...], wh, dims=((1,), (1,)))  # (heads, tm)
    ed_ref[...] = _mm(wh, adst_ref[...], dims=((1,), (1,)))   # (tm, heads)
    wh_ref[...] = wh.astype(wh_ref.dtype)


# Stage 2 (row-tiled over target nodes): LeakyReLU score, masked neighbour
# softmax (EUP approx reciprocal) and the neighbour-aggregation matmul.
def _gat_attn_kernel(ed_ref, wh_ref, est_ref, adj_ref, b_ref, o_ref, *,
                     heads, f_out, neg_slope, apply_relu, out_w):
    wh = wh_ref[...]                                  # (N, heads*f_out) bf16
    ed = ed_ref[...]                                  # (tm, heads) f32
    es = est_ref[...]                                 # (heads, N) f32
    mask = adj_ref[...] != 0                          # int8 adjacency
    bias = b_ref[...]
    outs = []
    for h in range(heads):
        s = ed[:, h:h + 1] + es[h:h + 1, :]           # (tm, N)
        s = jnp.where(s > 0, s, neg_slope * s)        # LeakyReLU(0.2)
        s = jnp.where(mask, s, -1e30)
        m = jnp.max(s, axis=-1, keepdims=True)
        p = jnp.exp(s - m)                            # masked entries underflow to 0
        alpha = p * pl.reciprocal(jnp.sum(p, axis=-1, keepdims=True), approx=True)
        agg = _mm(alpha, wh[:, h * f_out:(h + 1) * f_out])     # (tm, f_out)
        outs.append(agg + bias[:, h * f_out:(h + 1) * f_out])
    out = jnp.concatenate(outs, axis=-1) if heads > 1 else outs[0]
    if apply_relu:
        out = jnp.maximum(out, 0.0)
    hf = heads * f_out
    if out_w > hf:                                    # lane-dense zero-padded slab
        out = jnp.concatenate(
            [out, jnp.zeros((out.shape[0], out_w - hf), out.dtype)], axis=-1)
    o_ref[...] = out.astype(o_ref.dtype)


def _expand_att(att):
    """(heads, f_out) -> (heads, heads*f_out) block matrix for MXU scoring."""
    heads, f_out = att.shape
    m = jnp.zeros((heads, heads * f_out), jnp.float32)
    for h in range(heads):
        m = m.at[h, h * f_out:(h + 1) * f_out].set(att[h].astype(jnp.float32))
    return m


def gat_conv(x, p, adj, heads, f_out, apply_relu, tile_m, out_w):
    n, fin = x.shape
    hf = heads * f_out
    w = p["W"].astype(jnp.float32)
    w_pad = jnp.pad(w, ((0, fin - w.shape[0]), (0, 0))).astype(MXU_DT)
    asrc = _expand_att(p["att_src"]).astype(MXU_DT)
    adst = _expand_att(p["att_dst"]).astype(MXU_DT)
    bias = jnp.reshape(p["bias"], (1, hf)).astype(jnp.float32)
    grid = (n // tile_m,)

    wh, est, ed = pl.pallas_call(
        _gat_transform_kernel,
        out_shape=(jax.ShapeDtypeStruct((n, hf), MXU_DT),
                   jax.ShapeDtypeStruct((heads, n), jnp.float32),
                   jax.ShapeDtypeStruct((n, heads), jnp.float32)),
        grid=grid,
        in_specs=[pl.BlockSpec((tile_m, fin), lambda i: (i, 0)),
                  pl.BlockSpec((fin, hf), lambda i: (0, 0)),
                  pl.BlockSpec((heads, hf), lambda i: (0, 0)),
                  pl.BlockSpec((heads, hf), lambda i: (0, 0))],
        out_specs=(pl.BlockSpec((tile_m, hf), lambda i: (i, 0)),
                   pl.BlockSpec((heads, tile_m), lambda i: (0, i)),
                   pl.BlockSpec((tile_m, heads), lambda i: (i, 0))),
        compiler_params=_cparams(),
    )(x, w_pad, asrc, adst)

    kernel = functools.partial(_gat_attn_kernel, heads=heads, f_out=f_out,
                               neg_slope=0.2, apply_relu=apply_relu, out_w=out_w)
    return pl.pallas_call(
        kernel,
        out_shape=jax.ShapeDtypeStruct((n, out_w), MXU_DT),
        grid=grid,
        in_specs=[pl.BlockSpec((tile_m, heads), lambda i: (i, 0)),   # e_dst tile
                  pl.BlockSpec((n, hf), lambda i: (0, 0)),           # WH (all sources)
                  pl.BlockSpec((heads, n), lambda i: (0, 0)),        # e_src^T (all)
                  pl.BlockSpec((tile_m, n), lambda i: (i, 0)),       # int8 adjacency
                  pl.BlockSpec((1, hf), lambda i: (0, 0))],
        out_specs=pl.BlockSpec((tile_m, out_w), lambda i: (i, 0)),
        compiler_params=_cparams(),
    )(ed, wh, est, adj, bias)


# ------------------- fused jumping-knowledge (bi-LSTM + attn + sum) ----------

def _jk_lstm_kernel(*refs, hidden, seq_len):
    H, L = hidden, seq_len
    o_ref = refs[-1]
    xs = [refs[l][...] for l in range(L)]               # (tm, slab_w) bf16 slabs
    lr = refs[L:L + 9]                                   # 3 layers x (wih, whh, b)
    attn_w = refs[L + 9][...]                            # (L*2H, L) block-diag
    attn_b = refs[L + 10][...]                           # (1, 1)
    n = xs[0].shape[0]

    def cell(gates, c):
        i = jax.nn.sigmoid(gates[:, 0 * H:1 * H])
        f = jax.nn.sigmoid(gates[:, 1 * H:2 * H])
        g = jnp.tanh(gates[:, 2 * H:3 * H])
        o = jax.nn.sigmoid(gates[:, 3 * H:4 * H])
        c_new = f * c + i * g
        return o * jnp.tanh(c_new), c_new

    def bilstm(seq, wih_ref, whh_ref, b_ref):
        wih, whh, b = wih_ref[...], whh_ref[...], b_ref[...]
        xg = [_mm(seq[s], wih) + b for s in range(L)]    # fused fwd|rev input gates
        h_f = jnp.zeros((n, H), jnp.float32)
        c_f = jnp.zeros((n, H), jnp.float32)
        h_r = jnp.zeros((n, H), jnp.float32)
        c_r = jnp.zeros((n, H), jnp.float32)
        outs_f = [None] * L
        outs_r = [None] * L
        for s in range(L):                               # L is small: unroll
            t = L - 1 - s
            # ONE block-diag recurrence matmul for both directions per step.
            hg = _mm(jnp.concatenate([h_f, h_r], axis=-1), whh)   # (n, 8H)
            h_f, c_f = cell(xg[s][:, 0:4 * H] + hg[:, 0:4 * H], c_f)
            outs_f[s] = h_f
            h_r, c_r = cell(xg[t][:, 4 * H:8 * H] + hg[:, 4 * H:8 * H], c_r)
            outs_r[t] = h_r
        return [jnp.concatenate([outs_f[s], outs_r[s]], axis=-1) for s in range(L)]

    h = bilstm(xs, lr[0], lr[1], lr[2])
    h = bilstm(h, lr[3], lr[4], lr[5])
    h = bilstm(h, lr[6], lr[7], lr[8])

    # all L attention logits from a single matmul against block-diagonal attn_W
    logits = _mm(jnp.concatenate(h, axis=-1), attn_w) + attn_b     # (n, L)
    m = jnp.max(logits, axis=-1, keepdims=True)
    p = jnp.exp(logits - m)
    alpha = p / jnp.sum(p, axis=-1, keepdims=True)       # exact (off the hot loop)

    acc = xs[0].astype(jnp.float32) * alpha[:, 0:1]
    for l in range(1, L):
        acc = acc + xs[l].astype(jnp.float32) * alpha[:, l:l + 1]
    o_ref[...] = acc.astype(o_ref.dtype)


def jk_lstm(xs_slabs, lstm_params, attn_W, attn_b, hidden, tile_m):
    L = len(xs_slabs)
    H = hidden
    n, slab_w = xs_slabs[0].shape

    args = list(xs_slabs)
    in_specs = [pl.BlockSpec((tile_m, slab_w), lambda i: (i, 0))
                for _ in range(L)]

    for li, (pf, pr) in enumerate(lstm_params):          # 3 layers [fwd, rev]
        din = pf["W_ih"].shape[1]
        din_pad = slab_w if li == 0 else din              # layer 0 eats the slab
        wih = jnp.concatenate([pf["W_ih"].T, pr["W_ih"].T], axis=1)   # (din, 8H)
        wih = jnp.pad(wih, ((0, din_pad - din), (0, 0))).astype(MXU_DT)
        whh = jnp.zeros((2 * H, 8 * H), jnp.float32)
        whh = whh.at[:H, :4 * H].set(pf["W_hh"].T)
        whh = whh.at[H:, 4 * H:].set(pr["W_hh"].T)
        b = jnp.concatenate([pf["b_ih"] + pf["b_hh"],
                             pr["b_ih"] + pr["b_hh"]])[None, :]
        args += [wih, whh.astype(MXU_DT), b.astype(jnp.float32)]
        in_specs += [pl.BlockSpec((din_pad, 8 * H), lambda i: (0, 0)),
                     pl.BlockSpec((2 * H, 8 * H), lambda i: (0, 0)),
                     pl.BlockSpec((1, 8 * H), lambda i: (0, 0))]

    attn_bd = jnp.zeros((L * 2 * H, L), jnp.float32)
    for l in range(L):
        attn_bd = attn_bd.at[l * 2 * H:(l + 1) * 2 * H, l].set(attn_W[:, 0])
    args += [attn_bd.astype(MXU_DT),
             jnp.reshape(attn_b, (1, 1)).astype(jnp.float32)]
    in_specs += [pl.BlockSpec((L * 2 * H, L), lambda i: (0, 0)),
                 pl.BlockSpec((1, 1), lambda i: (0, 0))]

    return pl.pallas_call(
        functools.partial(_jk_lstm_kernel, hidden=H, seq_len=L),
        out_shape=jax.ShapeDtypeStruct((n, slab_w), MXU_DT),
        grid=(n // tile_m,),
        in_specs=in_specs,
        out_specs=pl.BlockSpec((tile_m, slab_w), lambda i: (i, 0)),
        compiler_params=_cparams(),
    )(*args)


# --------------------------- pooling + output head ---------------------------
# TODO(synk): LinearLayer activation for the output head assumed identity.

def _pool_head_kernel(pool_ref, x_ref, w_ref, b_ref, o_ref):
    pooled = _mm(pool_ref[...], x_ref[...])
    o_ref[...] = (_mm(pooled, w_ref[...]) + b_ref[...]).astype(o_ref.dtype)


def pool_head(pool, x, out_W, out_b):
    g = pool.shape[0]
    xw = x.shape[1]
    targets = out_W.shape[1]
    w_pad = jnp.pad(out_W.astype(jnp.float32),
                    ((0, xw - out_W.shape[0]), (0, 0))).astype(MXU_DT)
    return pl.pallas_call(
        _pool_head_kernel,
        out_shape=jax.ShapeDtypeStruct((g, targets), jnp.float32),
        in_specs=_vspec(4),
        out_specs=pl.BlockSpec(memory_space=VMEM),
    )(pool.astype(MXU_DT), x, w_pad,
      jnp.reshape(out_b, (1, -1)).astype(jnp.float32))


# --------------------------- model driver ------------------------------------

def xasnet_gat_forward(params, x, edge_index, batch_seg, num_graphs, cfg):
    heads = cfg["n_heads"]
    out_ch = cfg["out_channels"]
    n_real = x.shape[0]

    # single grid step for small graphs; 128-row tiles otherwise
    if n_real <= 256:
        n_pad = _round_up(n_real, 16)
        tile_m = n_pad
    else:
        n_pad = _round_up(n_real, 128)
        tile_m = 128

    xp = jnp.pad(x.astype(jnp.float32),
                 ((0, n_pad - n_real), (0, 0))).astype(MXU_DT)

    # dense int8 adjacency (target, source) with self loops (PyG GATConv
    # default); padded rows only get a self loop so their softmax stays well
    # defined and they never feed real nodes.
    adj = jnp.zeros((n_pad, n_pad), jnp.int8)
    adj = adj.at[edge_index[1], edge_index[0]].set(1)
    adj = jnp.maximum(adj, jnp.eye(n_pad, dtype=jnp.int8))

    # pre_layer + residual block fused into one row-parallel kernel.
    h = pre_res_block(xp, params, tile_m)                 # (n_pad, 128) bf16

    # hidden GAT layers with fused trailing ReLU; each layer writes a
    # lane-dense, 128-wide zero-padded slab (dropout is eval-mode identity).
    xs_slabs = []
    for i in range(cfg["n_layers"] - 1):
        h = gat_conv(h, params["gat"][i], adj, heads, out_ch[i], True,
                     tile_m, LANE)
        xs_slabs.append(h)

    # jumping knowledge: 3-layer bidirectional LSTM + attention + softmax +
    # weighted sum over the layer sequence, all in one row-parallel kernel.
    hidden = out_ch[-2]
    xjk = jk_lstm(xs_slabs, params["lstm"], params["attn_W"], params["attn_b"],
                  hidden, tile_m)

    # last GAT layer (single head, no trailing ReLU)
    xg = gat_conv(xjk, params["gat"][-1], adj, 1, out_ch[-1], False,
                  tile_m, LANE)

    # global_mean_pool as a (G, N) @ (N, F) matmul fused with the output head;
    # dropout is eval-mode identity.
    one_hot = (batch_seg[None, :] == jnp.arange(num_graphs)[:, None]).astype(jnp.float32)
    one_hot = jnp.pad(one_hot, ((0, 0), (0, n_pad - n_real)))
    pool = one_hot / jnp.sum(one_hot, axis=1, keepdims=True)
    return pool_head(pool, xg, params["out_W"], params["out_b"])


# --------------------------- parameters --------------------------------------

def init_params(key, cfg):
    kit = iter(jax.random.split(key, 128))

    def w(shape, scale=0.1):
        return scale * jax.random.normal(next(kit), shape, dtype=jnp.float32)

    nfd = cfg["node_features_dim"]
    in_ch, out_ch, heads = cfg["in_channels"], cfg["out_channels"], cfg["n_heads"]

    params = {
        "pre_W": w((nfd, in_ch[0])), "pre_b": w((in_ch[0],)),
        "res_W": [w((in_ch[0], in_ch[0])) for _ in range(4)],
        "res_b": [w((in_ch[0],)) for _ in range(4)],
    }

    gat = [{"W": w((in_ch[0], heads * out_ch[0])),
            "att_src": w((heads, out_ch[0])), "att_dst": w((heads, out_ch[0])),
            "bias": w((heads * out_ch[0],))}]
    for i in range(1, cfg["n_layers"] - 1):
        gat.append({"W": w((in_ch[i] * heads, heads * out_ch[i])),
                    "att_src": w((heads, out_ch[i])), "att_dst": w((heads, out_ch[i])),
                    "bias": w((heads * out_ch[i],))})
    gat.append({"W": w((in_ch[-1] * heads, out_ch[-1])),
                "att_src": w((1, out_ch[-1])), "att_dst": w((1, out_ch[-1])),
                "bias": w((out_ch[-1],))})
    params["gat"] = gat

    hidden = out_ch[-2]
    lstm = []
    for layer in range(3):
        in_size = out_ch[-2] * heads if layer == 0 else 2 * hidden
        lstm.append([{"W_ih": w((4 * hidden, in_size)),
                      "W_hh": w((4 * hidden, hidden)),
                      "b_ih": w((4 * hidden,)), "b_hh": w((4 * hidden,))}
                     for _ in range(2)])
    params["lstm"] = lstm

    params["attn_W"] = w((2 * hidden, 1))
    params["attn_b"] = w((1,))
    params["out_W"] = w((out_ch[-1], cfg["targets"]))
    params["out_b"] = w((cfg["targets"],))
    return params


# --------------------------- main --------------------------------------------

if __name__ == "__main__":
    cfg = dict(node_features_dim=8, n_layers=3, n_heads=2,
               in_channels=[16, 8, 8], out_channels=[8, 8, 16],
               targets=32, dropout=0.1)

    key = jax.random.PRNGKey(0)
    k_param, k_x = jax.random.split(key)
    params = init_params(k_param, cfg)

    nodes_per_graph, num_graphs = 6, 2
    n = nodes_per_graph * num_graphs
    x = jax.random.normal(k_x, (n, cfg["node_features_dim"]), dtype=jnp.float32)

    # deterministic ring graphs (bidirectional edges) per graph
    src, dst = [], []
    for g in range(num_graphs):
        base = g * nodes_per_graph
        for i in range(nodes_per_graph):
            j = (i + 1) % nodes_per_graph
            src += [base + i, base + j]
            dst += [base + j, base + i]
    edge_index = jnp.array([src, dst], dtype=jnp.int32)
    batch_seg = jnp.array([g for g in range(num_graphs)
                           for _ in range(nodes_per_graph)], dtype=jnp.int32)

    out = xasnet_gat_forward(params, x, edge_index, batch_seg, num_graphs, cfg)
    out = jax.block_until_ready(out)
    assert out.shape == (num_graphs, cfg["targets"]), out.shape
    print("KERNEL_OK")
</pallas_src>

<mosaic_0001>
module attributes {stable_mosaic.version = 11 : i64} {
  func.func @_pre_res_kernel(%arg0: i32, %arg1: memref<16x8xbf16, #tpu.memory_space<vmem>>, %arg2: memref<8x128xbf16, #tpu.memory_space<vmem>>, %arg3: memref<1x128xf32, #tpu.memory_space<vmem>>, %arg4: memref<128x128xbf16, #tpu.memory_space<vmem>>, %arg5: memref<1x128xf32, #tpu.memory_space<vmem>>, %arg6: memref<128x128xbf16, #tpu.memory_space<vmem>>, %arg7: memref<1x128xf32, #tpu.memory_space<vmem>>, %arg8: memref<128x128xbf16, #tpu.memory_space<vmem>>, %arg9: memref<1x128xf32, #tpu.memory_space<vmem>>, %arg10: memref<128x128xbf16, #tpu.memory_space<vmem>>, %arg11: memref<1x128xf32, #tpu.memory_space<vmem>>, %arg12: memref<16x128xbf16, #tpu.memory_space<vmem>>) attributes {dimension_semantics = [#tpu.dimension_semantics<parallel>], iteration_bounds = array<i64: 1>, scalar_prefetch = 0 : i64, scratch_operands = 0 : i64, tpu.core_type = #tpu.core_type<tc>, window_params = [{transform_indices = @transform_0, window_bounds = array<i64: 16, 8>}, {pipeline_mode = #tpu.pipeline_mode<synchronous>, transform_indices = @transform_1, window_bounds = array<i64: 8, 128>}, {pipeline_mode = #tpu.pipeline_mode<synchronous>, transform_indices = @transform_2, window_bounds = array<i64: 1, 128>}, {pipeline_mode = #tpu.pipeline_mode<synchronous>, transform_indices = @transform_3, window_bounds = array<i64: 128, 128>}, {pipeline_mode = #tpu.pipeline_mode<synchronous>, transform_indices = @transform_4, window_bounds = array<i64: 1, 128>}, {pipeline_mode = #tpu.pipeline_mode<synchronous>, transform_indices = @transform_5, window_bounds = array<i64: 128, 128>}, {pipeline_mode = #tpu.pipeline_mode<synchronous>, transform_indices = @transform_6, window_bounds = array<i64: 1, 128>}, {pipeline_mode = #tpu.pipeline_mode<synchronous>, transform_indices = @transform_7, window_bounds = array<i64: 128, 128>}, {pipeline_mode = #tpu.pipeline_mode<synchronous>, transform_indices = @transform_8, window_bounds = array<i64: 1, 128>}, {pipeline_mode = #tpu.pipeline_mode<synchronous>, transform_indices = @transform_9, window_bounds = array<i64: 128, 128>}, {pipeline_mode = #tpu.pipeline_mode<synchronous>, transform_indices = @transform_10, window_bounds = array<i64: 1, 128>}, {transform_indices = @transform_11, window_bounds = array<i64: 16, 128>}]} {
    %c0 = arith.constant 0 : index
    %c0_0 = arith.constant 0 : index
    %0 = vector.load %arg1[%c0, %c0_0] : memref<16x8xbf16, #tpu.memory_space<vmem>>, vector<16x8xbf16>
    %c0_1 = arith.constant 0 : index
    %c0_2 = arith.constant 0 : index
    %1 = vector.load %arg2[%c0_1, %c0_2] : memref<8x128xbf16, #tpu.memory_space<vmem>>, vector<8x128xbf16>
    %cst = arith.constant dense<0.000000e+00> : vector<16x128xf32>
    %2 = tpu.matmul %0, %1, %cst {dimension_numbers = #tpu.dot_dimension_numbers<[1], [0], [0], [1], [0, 0, 1, 1], [], []>} : vector<16x8xbf16>, vector<8x128xbf16>, vector<16x128xf32> -> vector<16x128xf32>
    %c0_3 = arith.constant 0 : index
    %c0_4 = arith.constant 0 : index
    %3 = vector.load %arg3[%c0_3, %c0_4] : memref<1x128xf32, #tpu.memory_space<vmem>>, vector<1x128xf32>
    %4 = vector.broadcast %3 : vector<1x128xf32> to vector<16x128xf32>
    %5 = arith.addf %2, %4 : vector<16x128xf32>
    %cst_5 = arith.constant 0.000000e+00 : f32
    %6 = vector.broadcast %cst_5 : f32 to vector<16x128xf32>
    %7 = arith.maximumf %5, %6 : vector<16x128xf32>
    %c0_6 = arith.constant 0 : index
    %c0_7 = arith.constant 0 : index
    %8 = vector.load %arg4[%c0_6, %c0_7] : memref<128x128xbf16, #tpu.memory_space<vmem>>, vector<128x128xbf16>
    %9 = arith.truncf %7 : vector<16x128xf32> to vector<16x128xbf16>
    %cst_8 = arith.constant dense<0.000000e+00> : vector<16x128xf32>
    %10 = tpu.matmul %9, %8, %cst_8 {dimension_numbers = #tpu.dot_dimension_numbers<[1], [0], [0], [1], [0, 0, 1, 1], [], []>} : vector<16x128xbf16>, vector<128x128xbf16>, vector<16x128xf32> -> vector<16x128xf32>
    %c0_9 = arith.constant 0 : index
    %c0_10 = arith.constant 0 : index
    %11 = vector.load %arg5[%c0_9, %c0_10] : memref<1x128xf32, #tpu.memory_space<vmem>>, vector<1x128xf32>
    %12 = vector.broadcast %11 : vector<1x128xf32> to vector<16x128xf32>
    %13 = arith.addf %10, %12 : vector<16x128xf32>
    %cst_11 = arith.constant 0.000000e+00 : f32
    %14 = vector.broadcast %cst_11 : f32 to vector<16x128xf32>
    %15 = arith.maximumf %13, %14 : vector<16x128xf32>
    %c0_12 = arith.constant 0 : index
    %c0_13 = arith.constant 0 : index
    %16 = vector.load %arg6[%c0_12, %c0_13] : memref<128x128xbf16, #tpu.memory_space<vmem>>, vector<128x128xbf16>
    %17 = arith.truncf %15 : vector<16x128xf32> to vector<16x128xbf16>
    %cst_14 = arith.constant dense<0.000000e+00> : vector<16x128xf32>
    %18 = tpu.matmul %17, %16, %cst_14 {dimension_numbers = #tpu.dot_dimension_numbers<[1], [0], [0], [1], [0, 0, 1, 1], [], []>} : vector<16x128xbf16>, vector<128x128xbf16>, vector<16x128xf32> -> vector<16x128xf32>
    %c0_15 = arith.constant 0 : index
    %c0_16 = arith.constant 0 : index
    %19 = vector.load %arg7[%c0_15, %c0_16] : memref<1x128xf32, #tpu.memory_space<vmem>>, vector<1x128xf32>
    %20 = vector.broadcast %19 : vector<1x128xf32> to vector<16x128xf32>
    %21 = arith.addf %18, %20 : vector<16x128xf32>
    %cst_17 = arith.constant 0.000000e+00 : f32
    %22 = vector.broadcast %cst_17 : f32 to vector<16x128xf32>
    %23 = arith.maximumf %21, %22 : vector<16x128xf32>
    %c0_18 = arith.constant 0 : index
    %c0_19 = arith.constant 0 : index
    %24 = vector.load %arg8[%c0_18, %c0_19] : memref<128x128xbf16, #tpu.memory_space<vmem>>, vector<128x128xbf16>
    %25 = arith.truncf %23 : vector<16x128xf32> to vector<16x128xbf16>
    %cst_20 = arith.constant dense<0.000000e+00> : vector<16x128xf32>
    %26 = tpu.matmul %25, %24, %cst_20 {dimension_numbers = #tpu.dot_dimension_numbers<[1], [0], [0], [1], [0, 0, 1, 1], [], []>} : vector<16x128xbf16>, vector<128x128xbf16>, vector<16x128xf32> -> vector<16x128xf32>
    %c0_21 = arith.constant 0 : index
    %c0_22 = arith.constant 0 : index
    %27 = vector.load %arg9[%c0_21, %c0_22] : memref<1x128xf32, #tpu.memory_space<vmem>>, vector<1x128xf32>
    %28 = vector.broadcast %27 : vector<1x128xf32> to vector<16x128xf32>
    %29 = arith.addf %26, %28 : vector<16x128xf32>
    %cst_23 = arith.constant 0.000000e+00 : f32
    %30 = vector.broadcast %cst_23 : f32 to vector<16x128xf32>
    %31 = arith.maximumf %29, %30 : vector<16x128xf32>
    %c0_24 = arith.constant 0 : index
    %c0_25 = arith.constant 0 : index
    %32 = vector.load %arg10[%c0_24, %c0_25] : memref<128x128xbf16, #tpu.memory_space<vmem>>, vector<128x128xbf16>
    %33 = arith.truncf %31 : vector<16x128xf32> to vector<16x128xbf16>
    %cst_26 = arith.constant dense<0.000000e+00> : vector<16x128xf32>
    %34 = tpu.matmul %33, %32, %cst_26 {dimension_numbers = #tpu.dot_dimension_numbers<[1], [0], [0], [1], [0, 0, 1, 1], [], []>} : vector<16x128xbf16>, vector<128x128xbf16>, vector<16x128xf32> -> vector<16x128xf32>
    %c0_27 = arith.constant 0 : index
    %c0_28 = arith.constant 0 : index
    %35 = vector.load %arg11[%c0_27, %c0_28] : memref<1x128xf32, #tpu.memory_space<vmem>>, vector<1x128xf32>
    %36 = vector.broadcast %35 : vector<1x128xf32> to vector<16x128xf32>
    %37 = arith.addf %34, %36 : vector<16x128xf32>
    %cst_29 = arith.constant 0.000000e+00 : f32
    %38 = vector.broadcast %cst_29 : f32 to vector<16x128xf32>
    %39 = arith.maximumf %37, %38 : vector<16x128xf32>
    %40 = arith.addf %7, %39 : vector<16x128xf32>
    %41 = arith.truncf %40 : vector<16x128xf32> to vector<16x128xbf16>
    %c0_30 = arith.constant 0 : index
    %c0_31 = arith.constant 0 : index
    %42 = vector.load %arg12[%c0_30, %c0_31] : memref<16x128xbf16, #tpu.memory_space<vmem>>, vector<16x128xbf16>
    tpu.vector_store %arg12[%c0_30, %c0_31], %41 {strides = array<i32>} : memref<16x128xbf16, #tpu.memory_space<vmem>>, vector<16x128xbf16>,
    return
  }
  func.func @transform_0(%arg0: i32) -> (i32, i32) {
    %c0_i32 = arith.constant 0 : i32
    %c0_i32_0 = arith.constant 0 : i32
    return %arg0, %c0_i32 : i32, i32
  }
  func.func @transform_1(%arg0: i32) -> (i32, i32) {
    %c0_i32 = arith.constant 0 : i32
    %c0_i32_0 = arith.constant 0 : i32
    %c0_i32_1 = arith.constant 0 : i32
    return %c0_i32, %c0_i32_0 : i32, i32
  }
  func.func @transform_2(%arg0: i32) -> (i32, i32) {
    %c0_i32 = arith.constant 0 : i32
    %c0_i32_0 = arith.constant 0 : i32
    %c0_i32_1 = arith.constant 0 : i32
    return %c0_i32, %c0_i32_0 : i32, i32
  }
  func.func @transform_3(%arg0: i32) -> (i32, i32) {
    %c0_i32 = arith.constant 0 : i32
    %c0_i32_0 = arith.constant 0 : i32
    %c0_i32_1 = arith.constant 0 : i32
    return %c0_i32, %c0_i32_0 : i32, i32
  }
  func.func @transform_4(%arg0: i32) -> (i32, i32) {
    %c0_i32 = arith.constant 0 : i32
    %c0_i32_0 = arith.constant 0 : i32
    %c0_i32_1 = arith.constant 0 : i32
    return %c0_i32, %c0_i32_0 : i32, i32
  }
  func.func @transform_5(%arg0: i32) -> (i32, i32) {
    %c0_i32 = arith.constant 0 : i32
    %c0_i32_0 = arith.constant 0 : i32
    %c0_i32_1 = arith.constant 0 : i32
    return %c0_i32, %c0_i32_0 : i32, i32
  }
  func.func @transform_6(%arg0: i32) -> (i32, i32) {
    %c0_i32 = arith.constant 0 : i32
    %c0_i32_0 = arith.constant 0 : i32
    %c0_i32_1 = arith.constant 0 : i32
    return %c0_i32, %c0_i32_0 : i32, i32
  }
  func.func @transform_7(%arg0: i32) -> (i32, i32) {
    %c0_i32 = arith.constant 0 : i32
    %c0_i32_0 = arith.constant 0 : i32
    %c0_i32_1 = arith.constant 0 : i32
    return %c0_i32, %c0_i32_0 : i32, i32
  }
  func.func @transform_8(%arg0: i32) -> (i32, i32) {
    %c0_i32 = arith.constant 0 : i32
    %c0_i32_0 = arith.constant 0 : i32
    %c0_i32_1 = arith.constant 0 : i32
    return %c0_i32, %c0_i32_0 : i32, i32
  }
  func.func @transform_9(%arg0: i32) -> (i32, i32) {
    %c0_i32 = arith.constant 0 : i32
    %c0_i32_0 = arith.constant 0 : i32
    %c0_i32_1 = arith.constant 0 : i32
    return %c0_i32, %c0_i32_0 : i32, i32
  }
  func.func @transform_10(%arg0: i32) -> (i32, i32) {
    %c0_i32 = arith.constant 0 : i32
    %c0_i32_0 = arith.constant 0 : i32
    %c0_i32_1 = arith.constant 0 : i32
    return %c0_i32, %c0_i32_0 : i32, i32
  }
  func.func @transform_11(%arg0: i32) -> (i32, i32) {
    %c0_i32 = arith.constant 0 : i32
    %c0_i32_0 = arith.constant 0 : i32
    return %arg0, %c0_i32 : i32, i32
  }
}

</mosaic_0001>

<bundles_post_ra>
// kernel: tpu_custom_call.1
= control target key start
LH: loop header
LB: loop body
LE: loop exit
PB: predicated region body
PF: predicated region fallthrough
CT: control target
= control target key end

     0   :  { %16 = vsyncpa [#allocation3], 0  ;;  %s1220_s0 = inlined_call_operand.vmem [shape: bf16[16,8], index: 0, kind: input, shape index: {}]   ;;  %s1221_s1 = inlined_call_operand.vmem [shape: bf16[8,128], index: 1, kind: input, shape index: {}]   ;;  %s1222_s2 = inlined_call_operand.vmem [shape: f32[1,128], index: 2, kind: input, shape index: {}]   ;;  %s1223_s3 = inlined_call_operand.hbm [shape: bf16[128,128], index: 3, kind: input, shape index: {}]   ;;  %s1224_s4 = inlined_call_operand.vmem [shape: f32[1,128], index: 4, kind: input, shape index: {}]   ;;  %s1225_s5 = inlined_call_operand.hbm [shape: bf16[128,128], index: 5, kind: input, shape index: {}]   ;;  %s1226_s6 = inlined_call_operand.vmem [shape: f32[1,128], index: 6, kind: input, shape index: {}]   ;;  %s1227_s7 = inlined_call_operand.hbm [shape: bf16[128,128], index: 7, kind: input, shape index: {}]   ;;  %s1228_s8 = inlined_call_operand.vmem [shape: f32[1,128], index: 8, kind: input, shape index: {}]   ;;  %s1229_s9 = inlined_call_operand.hbm [shape: bf16[128,128], index: 9, kind: input, shape index: {}]   ;;  %s1230_s10 = inlined_call_operand.vmem [shape: f32[1,128], index: 10, kind: input, shape index: {}]   ;;  %s1231_s11 = inlined_call_operand.hbm [shape: bf16[16,128], index: 11, kind: output, shape index: {}]  }
   0x1   :  { %17 = vsyncpa [#allocation6], 0 }
   0x2   :  { %18 = vsyncpa [#allocation9], 0 }
   0x3   :  { %19 = vsyncpa [#allocation4], 0  ;;  %s984_s17 = smov [#allocation5]   ;;  %s985_s19 = smov [#allocation2]  }
   0x4   :  { %s45_s18 = sshll.u32 %s984_s17, 4  ;;  %s31_s20 = sshll.u32 %s985_s19, 4  ;;  %s46_s18 = int_to_ptr.vmem [resolvable:$true] %s45_s18  ;;  %s1053_s20 = int_to_ptr.vmem [resolvable:$true] %s31_s20 }
   0x5   :  { %s866_s23 = scalar_lea.hbm %s1225_s5, 1024 }
   0x6   :  { %p867_p0 = scmp.ne.s32.totalorder %s1225_s5, %s866_s23  ;;  %p870_p1 = scmp.lt.u32.totalorder %s866_s23, %s1225_s5 }
   0x8   :  { %p872_p2 = pnand %p870_p1, %p867_p0 }
   0xa   :  { %875 = shalt.err (!%p872_p2)
}
   0xb   :  { %s876_s28 = scalar_lea.vmem %s46_s18, 1024  ;;  %p881_p4 = scmp.lt.s32.totalorder %s46_s18, %s46_s18 }
   0xc   :  { %p877_p3 = scmp.ne.s32.totalorder %s46_s18, %s876_s28  ;;  %p882_p5 = scmp.lt.s32.totalorder %s876_s28, %s876_s28 }
   0xe   :  { %p883_p6 = por %p882_p5, %p881_p4 }
  0x10   :  { %p884_p7 = pnand %p883_p6, %p877_p3 }
  0x12   :  { %887 = shalt.err (!%p884_p7)
}
  0x13   :  { %s986_s29 = smov 64   ;;  %s987_s30 = smov 4  }
  0x14   :  { %51 = dma.hbm_to_vmem [thread:$0]  %s1225_s5, 1024, %s46_s18, [#allocation6], %s986_s29, %s986_s29, %s987_s30  }
  0x15   :  { %s888_s16 = scalar_lea.hbm %s1223_s3, 1024 }
  0x16   :  { %p889_p8 = scmp.ne.s32.totalorder %s1223_s3, %s888_s16  ;;  %p892_p9 = scmp.lt.u32.totalorder %s888_s16, %s1223_s3 }
  0x18   :  { %p894_p10 = pnand %p892_p9, %p889_p8 }
  0x1a   :  { %897 = shalt.err (!%p894_p10)
}
  0x1b   :  { %s898_s23 = scalar_lea.vmem %s1053_s20, 1024  ;;  %p903_p12 = scmp.lt.s32.totalorder %s1053_s20, %s1053_s20 }
  0x1c   :  { %p899_p11 = scmp.ne.s32.totalorder %s1053_s20, %s898_s23  ;;  %p904_p13 = scmp.lt.s32.totalorder %s898_s23, %s898_s23 }
  0x1e   :  { %p905_p0 = por %p904_p13, %p903_p12 }
  0x20   :  { %p906_p1 = pnand %p905_p0, %p899_p11 }
  0x22   :  { %909 = shalt.err (!%p906_p1)
}
  0x23   :  { %37 = dma.hbm_to_vmem [thread:$0]  %s1223_s3, 1024, %s1053_s20, [#allocation3], %s986_s29, %s986_s29, %s987_s30  }
  0x24   :  { %s988_s24 = smov [#allocation7]   ;;  %s989_s26 = smov [#allocation8]  }
  0x25   :  { %s59_s25 = sshll.u32 %s988_s24, 4  ;;  %s73_s27 = sshll.u32 %s989_s26, 4  ;;  %s60_s25 = int_to_ptr.vmem [resolvable:$true] %s59_s25  ;;  %s1090_s27 = int_to_ptr.vmem [resolvable:$true] %s73_s27 }
  0x26   :  { %s910_s13 = scalar_lea.hbm %s1227_s7, 1024 }
  0x27   :  { %p911_p2 = scmp.ne.s32.totalorder %s1227_s7, %s910_s13  ;;  %p914_p3 = scmp.lt.u32.totalorder %s910_s13, %s1227_s7 }
  0x29   :  { %p916_p4 = pnand %p914_p3, %p911_p2 }
  0x2b   :  { %919 = shalt.err (!%p916_p4)
}
  0x2c   :  { %s920_s3 = scalar_lea.vmem %s60_s25, 1024  ;;  %p925_p6 = scmp.lt.s32.totalorder %s60_s25, %s60_s25 }
  0x2d   :  { %p921_p5 = scmp.ne.s32.totalorder %s60_s25, %s920_s3  ;;  %p926_p7 = scmp.lt.s32.totalorder %s920_s3, %s920_s3 }
  0x2f   :  { %p927_p8 = por %p926_p7, %p925_p6 }
  0x31   :  { %p928_p9 = pnand %p927_p8, %p921_p5 }
  0x33   :  { %931 = shalt.err (!%p928_p9)
}
  0x34   :  { %65 = dma.hbm_to_vmem [thread:$0]  %s1227_s7, 1024, %s60_s25, [#allocation6], %s986_s29, %s986_s29, %s987_s30  }
  0x35   :  { %s932_s23 = scalar_lea.hbm %s1229_s9, 1024 }
  0x36   :  { %p933_p10 = scmp.ne.s32.totalorder %s1229_s9, %s932_s23  ;;  %p936_p11 = scmp.lt.u32.totalorder %s932_s23, %s1229_s9 }
  0x38   :  { %p938_p12 = pnand %p936_p11, %p933_p10 }
  0x3a   :  { %941 = shalt.err (!%p938_p12)
}
  0x3b   :  { %s942_s28 = scalar_lea.vmem %s1090_s27, 1024  ;;  %p947_p0 = scmp.lt.s32.totalorder %s1090_s27, %s1090_s27 }
  0x3c   :  { %p943_p13 = scmp.ne.s32.totalorder %s1090_s27, %s942_s28  ;;  %p948_p1 = scmp.lt.s32.totalorder %s942_s28, %s942_s28 }
  0x3e   :  { %p949_p2 = por %p948_p1, %p947_p0 }
  0x40   :  { %p950_p3 = pnand %p949_p2, %p943_p13 }
  0x42   :  { %953 = shalt.err (!%p950_p3)
}
  0x43   :  { %79 = dma.hbm_to_vmem [thread:$0]  %s1229_s9, 1024, %s1090_s27, [#allocation9], %s986_s29, %s986_s29, %s987_s30  }
  0x44   :  { %976 = dma.done.wait [#allocation3], 1024  }
  0x45   :  { %977 = vsyncadd [#allocation3], 4294966272 }
  0x46   :  { %978 = dma.done.wait [#allocation6], 2048  }
  0x47   :  { %979 = vsyncadd [#allocation6], 4294965248 }
  0x48   :  { %980 = dma.done.wait [#allocation9], 1024  }
  0x49   :  { %981 = vsyncadd [#allocation9], 4294966272  ;;  %v990_v0 = vmov 0.0   ;;  %vm991_vm0 = vmmov 0   ;;  %vm114_vm1 = vcmask 1043456   ;;  %v833_v3 = vld [vmem:[%s1220_s0] sm:$0xff]  }
  0x4a   :  { %738 = vmatprep.subr.bf16.mxu0 %v990_v0  ;;  %740 = vmatprep.mubr.msk.bf16.mxu0 %vm991_vm0, %v990_v0  ;;  %v97_v1 = vld [vmem:[%s1221_s1] sm:$0xf]  ;;  %vm110_vm2 = vcmask 64512   ;;  %v834_v4 = vld [vmem:[#allocation2] sm:$0xff]   ;;  %v835_v5 = vld [vmem:[#allocation2 + $0x8] sm:$0xff]  }
  0x4b   :  { %744 = vmatprep.subr.bf16.mxu1 %v990_v0  ;;  %760 = vmatprep.mubr.msk.bf16.mxu1 %vm991_vm0, %v990_v0  ;;  %v116_v2 = vsel %vm114_vm1, %v97_v1, 0  ;;  %v836_v6 = vld [vmem:[#allocation2 + $0x10] sm:$0xff]   ;;  %v837_v7 = vld [vmem:[#allocation2 + $0x18] sm:$0xff]   ;;  %v838_v8 = vld [vmem:[#allocation2 + $0x20] sm:$0xff]  }
  0x4c   :  { %739 = vmatpush3.bf16.msra.mxu0 %v116_v2  ;;  %745 = vmatpush3.bf16.msra.mxu1 %v834_v4  ;;  %v839_v9 = vld [vmem:[#allocation2 + $0x28] sm:$0xff]   ;;  %v840_v10 = vld [vmem:[#allocation2 + $0x30] sm:$0xff]   ;;  %v841_v11 = vld [vmem:[#allocation2 + $0x38] sm:$0xff]  }
  0x4d   :  { %764 = vmatprep.subr.bf16.mxu0 %v990_v0  ;;  %746 = vmatprep.subr.bf16.mxu1 %v990_v0  ;;  %v842_v12 = vld [vmem:[#allocation5] sm:$0xff]   ;;  %v843_v13 = vld [vmem:[#allocation5 + $0x8] sm:$0xff]   ;;  %v844_v14 = vld [vmem:[#allocation5 + $0x10] sm:$0xff]  }
  0x4e   :  { %v845_v15 = vld [vmem:[#allocation5 + $0x18] sm:$0xff]   ;;  %v846_v16 = vld [vmem:[#allocation5 + $0x20] sm:$0xff]   ;;  %v847_v17 = vld [vmem:[#allocation5 + $0x28] sm:$0xff]  }
  0x4f   :  { %741 = vmatmul.mubr.msk.bf16.vlgmr.msra.gmra.mrb[0].mxu0 %vm110_vm2, %v833_v3  ;;  %v652_v18 = vld [vmem:[%s1222_s2] ss:$0 sm:$0xff]  ;;  %v849_v29 = vld [vmem:[#allocation5 + $0x38] sm:$0xff]   ;;  %v850_v30 = vld [vmem:[#allocation7] sm:$0xff]  }
  0x50   :  { %780 = vmatprep.mubr.msk.bf16.mxu0 %vm991_vm0, %v990_v0  ;;  %747 = vmatpush3.bf16.msra.mxu1 %v835_v5  ;;  %v848_v28 = vld [vmem:[#allocation5 + $0x30] sm:$0xff]   ;;  %v851_v31 = vld [vmem:[#allocation7 + $0x8] sm:$0xff]   ;;  %v853_v33 = vld [vmem:[#allocation7 + $0x18] sm:$0xff]  }
  0x51   :  { %748 = vmatprep.subr.bf16.mxu1 %v990_v0  ;;  %765 = vmatpush3.bf16.msra.mxu0 %v842_v12  ;;  %v852_v32 = vld [vmem:[#allocation7 + $0x10] sm:$0xff]   ;;  %v854_v34 = vld [vmem:[#allocation7 + $0x20] sm:$0xff]   ;;  %v855_v35 = vld [vmem:[#allocation7 + $0x28] sm:$0xff]  }
  0x52   :  { %766 = vmatprep.subr.bf16.mxu0 %v990_v0  ;;  %v655_v36 = vld [vmem:[%s1224_s4] ss:$0 sm:$0xff]  ;;  %v857_v47 = vld [vmem:[#allocation7 + $0x38] sm:$0xff]   ;;  %v858_v48 = vld [vmem:[#allocation8] sm:$0xff]  }
  0x53   :  { %v856_v46 = vld [vmem:[#allocation7 + $0x30] sm:$0xff]   ;;  %v859_v49 = vld [vmem:[#allocation8 + $0x8] sm:$0xff]   ;;  %v861_v51 = vld [vmem:[#allocation8 + $0x18] sm:$0xff]  }
  0x54   :  { %749 = vmatpush3.bf16.msra.mxu1 %v836_v6  ;;  %v860_v50 = vld [vmem:[#allocation8 + $0x10] sm:$0xff]   ;;  %v862_v52 = vld [vmem:[#allocation8 + $0x20] sm:$0xff]   ;;  %v863_v53 = vld [vmem:[#allocation8 + $0x28] sm:$0xff]  }
  0x55   :  { %750 = vmatprep.subr.bf16.mxu1 %v990_v0  ;;  %767 = vmatpush3.bf16.msra.mxu0 %v843_v13  ;;  %v664_v54 = vld [vmem:[%s1226_s6] ss:$0 sm:$0xff]  ;;  %v865_v2 = vld [vmem:[#allocation8 + $0x38] sm:$0xff]  }
  0x56   :  { %768 = vmatprep.subr.bf16.mxu0 %v990_v0  ;;  %v864_v1 = vld [vmem:[#allocation8 + $0x30] sm:$0xff]  }
  0x57   :  { %v673_v3 = vld [vmem:[%s1228_s8] ss:$0 sm:$0xff]  ;;  %s992_s8 = smov [#allocation10]  }
  0x58   :  { %751 = vmatpush3.bf16.msra.mxu1 %v837_v7  ;;  %s638_s20 = sshll.u32 %s992_s8, 4  ;;  %s639_s20 = int_to_ptr.vmem [resolvable:$true] %s638_s20 }
  0x59   :  { %752 = vmatprep.subr.bf16.mxu1 %v990_v0  ;;  %769 = vmatpush3.bf16.msra.mxu0 %v844_v14  ;;  %p959_p5 = scmp.lt.s32.totalorder %s639_s20, %s639_s20 }
  0x5a   :  { %770 = vmatprep.subr.bf16.mxu0 %v990_v0 }
  0x5c   :  { %753 = vmatpush3.bf16.msra.mxu1 %v838_v8 }
  0x5d   :  { %754 = vmatprep.subr.bf16.mxu1 %v990_v0  ;;  %771 = vmatpush3.bf16.msra.mxu0 %v845_v15 }
  0x5e   :  { %772 = vmatprep.subr.bf16.mxu0 %v990_v0 }
  0x60   :  { %755 = vmatpush3.bf16.msra.mxu1 %v839_v9 }
  0x61   :  { %756 = vmatprep.subr.bf16.mxu1 %v990_v0  ;;  %773 = vmatpush3.bf16.msra.mxu0 %v846_v16 }
  0x62   :  { %774 = vmatprep.subr.bf16.mxu0 %v990_v0 }
  0x64   :  { %757 = vmatpush3.bf16.msra.mxu1 %v840_v10 }
  0x65   :  { %758 = vmatprep.subr.bf16.mxu1 %v990_v0  ;;  %775 = vmatpush3.bf16.msra.mxu0 %v847_v17 }
  0x66   :  { %776 = vmatprep.subr.bf16.mxu0 %v990_v0 }
  0x68   :  { %759 = vmatpush3.bf16.msra.mxu1 %v841_v11 }
  0x69   :  { %784 = vmatprep.subr.bf16.mxu1 %v990_v0  ;;  %777 = vmatpush3.bf16.msra.mxu0 %v848_v28 }
  0x6a   :  { %778 = vmatprep.subr.bf16.mxu0 %v990_v0 }
  0x6d   :  { %779 = vmatpush3.bf16.msra.mxu0 %v849_v29 }
  0x6e   :  { %804 = vmatprep.subr.bf16.mxu0 %v990_v0 }
 0x122   :  { %v152_v19 = vpop.f32.mrb[0].mxu0 }
 0x123   :  { %v1159_v20 = vadd.f32 %v652_v18, %v152_v19  ;;  %v742_v21 = vpop.f32.mrb[1].mxu0 }
 0x124   :  { %v155_v22 = vpop.f32.mrb[2].mxu0 }
 0x125   :  { %v1161_v23 = vadd.f32 %v652_v18, %v155_v22  ;;  %v743_v24 = vpop.f32.mrb[3].mxu0  ;;  %v159_v25 = vmax.f32 %v1159_v20, 0.0 }
 0x127   :  { %v160_v26 = vmax.f32 %v1161_v23, 0.0 }
 0x129   :  { %v177_v27 = vpack.c.bf16 %v160_v26, %v159_v25 }
 0x12b   :  { %761 = vmatmul.mubr.bf16.vlgmr.msra.gmra.mrb[0].mxu1 %v177_v27 }
 0x12c   :  { %800 = vmatprep.mubr.msk.bf16.mxu1 %vm991_vm0, %v990_v0  ;;  %785 = vmatpush3.bf16.msra.mxu1 %v850_v30 }
 0x12d   :  { %786 = vmatprep.subr.bf16.mxu1 %v990_v0 }
 0x130   :  { %787 = vmatpush3.bf16.msra.mxu1 %v851_v31 }
 0x131   :  { %788 = vmatprep.subr.bf16.mxu1 %v990_v0 }
 0x134   :  { %789 = vmatpush3.bf16.msra.mxu1 %v852_v32 }
 0x135   :  { %790 = vmatprep.subr.bf16.mxu1 %v990_v0 }
 0x138   :  { %791 = vmatpush3.bf16.msra.mxu1 %v853_v33 }
 0x139   :  { %792 = vmatprep.subr.bf16.mxu1 %v990_v0 }
 0x13c   :  { %793 = vmatpush3.bf16.msra.mxu1 %v854_v34 }
 0x13d   :  { %794 = vmatprep.subr.bf16.mxu1 %v990_v0 }
 0x140   :  { %795 = vmatpush3.bf16.msra.mxu1 %v855_v35 }
 0x141   :  { %796 = vmatprep.subr.bf16.mxu1 %v990_v0 }
 0x144   :  { %797 = vmatpush3.bf16.msra.mxu1 %v856_v46 }
 0x145   :  { %798 = vmatprep.subr.bf16.mxu1 %v990_v0 }
 0x148   :  { %799 = vmatpush3.bf16.msra.mxu1 %v857_v47 }
 0x1fe   :  { %v267_v37 = vpop.f32.mrb[0].mxu1 }
 0x1ff   :  { %v268_v38 = vadd.f32 %v655_v36, %v267_v37  ;;  %v762_v39 = vpop.f32.mrb[1].mxu1 }
 0x200   :  { %v270_v40 = vpop.f32.mrb[2].mxu1 }
 0x201   :  { %v271_v41 = vadd.f32 %v655_v36, %v270_v40  ;;  %v763_v42 = vpop.f32.mrb[3].mxu1  ;;  %v274_v43 = vmax.f32 %v268_v38, 0.0 }
 0x203   :  { %v275_v44 = vmax.f32 %v271_v41, 0.0 }
 0x205   :  { %v292_v45 = vpack.c.bf16 %v275_v44, %v274_v43 }
 0x207   :  { %781 = vmatmul.mubr.bf16.vlgmr.msra.gmra.mrb[4].mxu0 %v292_v45 }
 0x208   :  { %820 = vmatprep.mubr.msk.bf16.mxu0 %vm991_vm0, %v990_v0  ;;  %805 = vmatpush3.bf16.msra.mxu0 %v858_v48 }
 0x209   :  { %806 = vmatprep.subr.bf16.mxu0 %v990_v0 }
 0x20c   :  { %807 = vmatpush3.bf16.msra.mxu0 %v859_v49 }
 0x20d   :  { %808 = vmatprep.subr.bf16.mxu0 %v990_v0 }
 0x210   :  { %809 = vmatpush3.bf16.msra.mxu0 %v860_v50 }
 0x211   :  { %810 = vmatprep.subr.bf16.mxu0 %v990_v0 }
 0x214   :  { %811 = vmatpush3.bf16.msra.mxu0 %v861_v51 }
 0x215   :  { %812 = vmatprep.subr.bf16.mxu0 %v990_v0 }
 0x218   :  { %813 = vmatpush3.bf16.msra.mxu0 %v862_v52 }
 0x219   :  { %814 = vmatprep.subr.bf16.mxu0 %v990_v0 }
 0x21c   :  { %815 = vmatpush3.bf16.msra.mxu0 %v863_v53 }
 0x21d   :  { %816 = vmatprep.subr.bf16.mxu0 %v990_v0 }
 0x220   :  { %817 = vmatpush3.bf16.msra.mxu0 %v864_v1 }
 0x221   :  { %818 = vmatprep.subr.bf16.mxu0 %v990_v0  ;;  %v682_v0 = vld [vmem:[%s1230_s10] ss:$0 sm:$0xff]  ;;  %s954_s10 = scalar_lea.vmem %s639_s20, 128 }
 0x222   :  { %p955_p4 = scmp.ne.s32.totalorder %s639_s20, %s954_s10  ;;  %p960_p6 = scmp.lt.s32.totalorder %s954_s10, %s954_s10 }
 0x224   :  { %819 = vmatpush3.bf16.msra.mxu0 %v865_v2  ;;  %p961_p7 = por %p960_p6, %p959_p5 }
 0x226   :  { %p962_p8 = pnand %p961_p7, %p955_p4 }
 0x2da   :  { %v382_v55 = vpop.f32.mrb[4].mxu0 }
 0x2db   :  { %v383_v56 = vadd.f32 %v664_v54, %v382_v55  ;;  %v782_v57 = vpop.f32.mrb[5].mxu0 }
 0x2dc   :  { %v385_v58 = vpop.f32.mrb[6].mxu0 }
 0x2dd   :  { %v386_v59 = vadd.f32 %v664_v54, %v385_v58  ;;  %v783_v60 = vpop.f32.mrb[7].mxu0  ;;  %v389_v61 = vmax.f32 %v383_v56, 0.0 }
 0x2df   :  { %v390_v62 = vmax.f32 %v386_v59, 0.0 }
 0x2e1   :  { %v407_v63 = vpack.c.bf16 %v390_v62, %v389_v61 }
 0x2e3   :  { %801 = vmatmul.mubr.bf16.vlgmr.msra.gmra.mrb[4].mxu1 %v407_v63 }
 0x3b6   :  { %v497_v4 = vpop.f32.mrb[4].mxu1 }
 0x3b7   :  { %v498_v5 = vadd.f32 %v673_v3, %v497_v4  ;;  %v802_v6 = vpop.f32.mrb[5].mxu1 }
 0x3b8   :  { %v500_v7 = vpop.f32.mrb[6].mxu1 }
 0x3b9   :  { %v501_v8 = vadd.f32 %v673_v3, %v500_v7  ;;  %v803_v9 = vpop.f32.mrb[7].mxu1  ;;  %v504_v10 = vmax.f32 %v498_v5, 0.0 }
 0x3bb   :  { %v505_v11 = vmax.f32 %v501_v8, 0.0 }
 0x3bd   :  { %v522_v12 = vpack.c.bf16 %v505_v11, %v504_v10 }
 0x3bf   :  { %821 = vmatmul.mubr.bf16.vlgmr.msra.gmra.mrb[8].mxu0 %v522_v12 }
 0x492   :  { %v612_v13 = vpop.f32.mrb[8].mxu0 }
 0x493   :  { %v613_v14 = vadd.f32 %v682_v0, %v612_v13  ;;  %v822_v15 = vpop.f32.mrb[9].mxu0 }
 0x494   :  { %v615_v16 = vpop.f32.mrb[10].mxu0 }
 0x495   :  { %v619_v17 = vmax.f32 %v613_v14, 0.0  ;;  %v616_v18 = vadd.f32 %v682_v0, %v615_v16  ;;  %v823_v19 = vpop.f32.mrb[11].mxu0 }
 0x497   :  { %v620_v21 = vmax.f32 %v616_v18, 0.0  ;;  %v621_v22 = vadd.f32 %v619_v17, %v159_v25 }
 0x499   :  { %v622_v24 = vadd.f32 %v620_v21, %v160_v26 }
 0x49b   :  { %v698_v27 = vpack.c.bf16 %v622_v24, %v621_v22 }
 0x49d   :  { %699 = vst [vmem:[#allocation10] sm:$0xff] %v698_v27  }
 0x49e   :  { %965 = shalt.err (!%p962_p8)
}
 0x49f   :  { %s966_s22 = scalar_lea.hbm %s1231_s11, 128 }
 0x4a0   :  { %p967_p9 = scmp.ne.s32.totalorder %s1231_s11, %s966_s22  ;;  %p970_p10 = scmp.lt.u32.totalorder %s966_s22, %s1231_s11 }
 0x4a2   :  { %p972_p11 = pnand %p970_p10, %p967_p9 }
 0x4a4   :  { %975 = shalt.err (!%p972_p11)
}
 0x4a5   :  { %644 = dma.vmem_to_hbm [thread:$0]  %s639_s20, 128, %s1231_s11, [#allocation4], %s986_s29, %s986_s29, %s987_s30  }
 0x4a6   :  { %982 = dma.done.wait [#allocation4], 128  }
 0x4a7   :  { %983 = vsyncadd [#allocation4], 4294967168 }
 0x4a8   :  { %648 = vsyncpa [#allocation3], 1 }
 0x4a9   :  { %649 = vsyncpa [#allocation6], 1 }
 0x4aa   :  { %650 = vsyncpa [#allocation9], 1 }
 0x4ab   :  { %651 = vsyncpa [#allocation4], 1 }

</bundles_post_ra>
